<compile_context>
chip_gen: v7x
topology: tpu7x:2x2x1
jax: 0.10.0
libtpu: 0.0.40
codegen_flags: <defaults>
</compile_context>

<pallas_src>
import functools

import jax
import jax.numpy as jnp
from jax.experimental import pallas as pl
from jax.experimental.pallas import tpu as pltpu

LN_EPS = 1e-5


def gru_seq_kernel(gi_ref, h0_ref, whh_ref, bhn_ref, gamma_ref, beta_ref,
                   y_ref, hT_ref, h_scr, *, use_layer_norm):
    """One GRU(+LN) step per grid iteration t; weights stay VMEM-resident."""
    t = pl.program_id(0)

    @pl.when(t == 0)
    def _():
        h_scr[...] = h0_ref[...].astype(jnp.float32)

    h = h_scr[...]                                    # (B, H) f32 carry
    H = h.shape[-1]

    # Recurrent projection on the MXU (bf16/f32 operands, f32 accumulation).
    gh = jnp.dot(h.astype(whh_ref.dtype), whh_ref[...],
                 preferred_element_type=jnp.float32)  # (B, 3H)

    # Precomputed input projection; b_ih (all gates) and b_hh (r, z) folded in.
    gi = gi_ref[0]                                    # (B, 3H) f32

    r = jax.nn.sigmoid(gi[:, 0:H] + gh[:, 0:H])
    z = jax.nn.sigmoid(gi[:, H:2 * H] + gh[:, H:2 * H])
    n = jnp.tanh(gi[:, 2 * H:] + r * (gh[:, 2 * H:] + bhn_ref[...]))
    h_new = (1.0 - z) * n + z * h
    h_scr[...] = h_new

    if use_layer_norm:
        mean = jnp.mean(h_new, axis=-1, keepdims=True)
        c = h_new - mean
        var = jnp.mean(c * c, axis=-1, keepdims=True)
        y = c * jax.lax.rsqrt(var + LN_EPS) * gamma_ref[...] + beta_ref[...]
    else:
        y = h_new

    y_ref[0] = y.astype(y_ref.dtype)

    @pl.when(t == pl.num_programs(0) - 1)
    def _():
        hT_ref[...] = h_new.astype(hT_ref.dtype)


def prepare_gru_params(w_ih, w_hh, b_ih, b_hh, gamma, beta,
                       compute_dtype=jnp.bfloat16):
    """One-time weight prep: transpose to (H, 3H), cast, fold r/z biases."""
    H = w_ih.shape[1]
    wih_t = jnp.transpose(w_ih).astype(compute_dtype)      # (H, 3H)
    whh_t = jnp.transpose(w_hh).astype(compute_dtype)      # (H, 3H)
    # All of b_ih plus the r/z portion of b_hh fold into the input projection.
    b_gi = (b_ih.astype(jnp.float32)
            + jnp.concatenate([b_hh[:2 * H],
                               jnp.zeros((H,), b_hh.dtype)]).astype(jnp.float32)
            ).reshape(1, 3 * H)
    b_hn = b_hh[2 * H:].astype(jnp.float32).reshape(1, H)
    return dict(wih_t=wih_t, whh_t=whh_t, b_gi=b_gi, b_hn=b_hn,
                gamma=gamma.astype(jnp.float32).reshape(1, H),
                beta=beta.astype(jnp.float32).reshape(1, H))


def rnn_layer_seq(xs, h0, params, use_layer_norm=True):
    """Run the GRU(+LN) over a sequence. xs: (T,B,H), h0: (B,H) -> (ys, h_T)."""
    T, B, H = xs.shape
    cd = params["wih_t"].dtype

    # Input projection for the whole sequence: one large matmul, M = T*B
    # (uses the MXU efficiently; only h @ W_hh^T is serial per step).
    gi = jnp.dot(xs.reshape(T * B, H).astype(cd), params["wih_t"],
                 preferred_element_type=jnp.float32) + params["b_gi"]
    gi = gi.reshape(T, B, 3 * H)

    const = lambda shape: pl.BlockSpec(shape, lambda t: (0,) * len(shape))
    kernel = functools.partial(gru_seq_kernel, use_layer_norm=use_layer_norm)

    ys, h_T = pl.pallas_call(
        kernel,
        out_shape=(jax.ShapeDtypeStruct((T, B, H), xs.dtype),
                   jax.ShapeDtypeStruct((B, H), xs.dtype)),
        grid_spec=pltpu.PrefetchScalarGridSpec(
            num_scalar_prefetch=0,
            grid=(T,),
            in_specs=[
                pl.BlockSpec((1, B, 3 * H), lambda t: (t, 0, 0)),  # gi[t] streamed
                const((B, H)),          # h0      (resident)
                const((H, 3 * H)),      # W_hh^T  (resident, never re-DMAed)
                const((1, H)),          # b_hn    (resident)
                const((1, H)),          # gamma   (resident)
                const((1, H)),          # beta    (resident)
            ],
            out_specs=(
                pl.BlockSpec((1, B, H), lambda t: (t, 0, 0)),      # y[t]
                const((B, H)),                                     # h_T
            ),
            scratch_shapes=[pltpu.VMEM((B, H), jnp.float32)],      # h carry
        ),
        # The time axis is a true recurrence -> "arbitrary" (sequential).
        # NOTE: for large B (v7x dual-TC), add a leading batch-tile grid axis
        # marked "parallel"; for large H, tile the 3H axis and set
        # vmem_limit_bytes explicitly.
        compiler_params=pltpu.CompilerParams(
            dimension_semantics=("arbitrary",)),
    )(gi, h0, params["whh_t"], params["b_hn"], params["gamma"], params["beta"])
    return ys, h_T


def rnn_layer(x, h, params, use_layer_norm=True):
    """Single step, matching RnnLayer.forward(x, h) -> (y, h_new)."""
    ys, h_new = rnn_layer_seq(x[None], h, params, use_layer_norm=use_layer_norm)
    return ys[0], h_new


# ----------------------------- pure-JAX reference -----------------------------
def gru_ln_ref_step(x, h, w_ih, w_hh, b_ih, b_hh, gamma, beta,
                    use_layer_norm=True, compute_dtype=jnp.float32):
    H = x.shape[-1]
    cd = compute_dtype
    gi = jnp.dot(x.astype(cd), w_ih.T.astype(cd),
                 preferred_element_type=jnp.float32) + b_ih
    gh = jnp.dot(h.astype(cd), w_hh.T.astype(cd),
                 preferred_element_type=jnp.float32) + b_hh
    i_r, i_z, i_n = gi[:, :H], gi[:, H:2 * H], gi[:, 2 * H:]
    h_r, h_z, h_n = gh[:, :H], gh[:, H:2 * H], gh[:, 2 * H:]
    r = jax.nn.sigmoid(i_r + h_r)
    z = jax.nn.sigmoid(i_z + h_z)
    n = jnp.tanh(i_n + r * h_n)
    h_new = (1.0 - z) * n + z * h
    if use_layer_norm:
        mean = jnp.mean(h_new, axis=-1, keepdims=True)
        var = jnp.mean((h_new - mean) ** 2, axis=-1, keepdims=True)
        y = (h_new - mean) / jnp.sqrt(var + LN_EPS) * gamma + beta
    else:
        y = h_new
    return y, h_new


def rnn_layer_seq_ref(xs, h0, w_ih, w_hh, b_ih, b_hh, gamma, beta,
                      use_layer_norm=True, compute_dtype=jnp.float32):
    ys, h = [], h0
    for t in range(xs.shape[0]):
        y, h = gru_ln_ref_step(xs[t], h, w_ih, w_hh, b_ih, b_hh, gamma, beta,
                               use_layer_norm, compute_dtype)
        ys.append(y)
    return jnp.stack(ys), h


if __name__ == "__main__":
    B, H, T = 8, 128, 16  # batch, hidden_size, timesteps

    key = jax.random.PRNGKey(0)
    k = jax.random.split(key, 8)
    scale = 1.0 / jnp.sqrt(H)  # PyTorch-style uniform(-1/sqrt(H), 1/sqrt(H))

    xs = jax.random.normal(k[0], (T, B, H), dtype=jnp.float32)
    h0 = jax.random.normal(k[1], (B, H), dtype=jnp.float32)
    w_ih = jax.random.uniform(k[2], (3 * H, H), jnp.float32, -scale, scale)
    w_hh = jax.random.uniform(k[3], (3 * H, H), jnp.float32, -scale, scale)
    b_ih = jax.random.uniform(k[4], (3 * H,), jnp.float32, -scale, scale)
    b_hh = jax.random.uniform(k[5], (3 * H,), jnp.float32, -scale, scale)
    gamma = jnp.ones((H,), jnp.float32)
    beta = jnp.zeros((H,), jnp.float32)

    seq_fn = jax.jit(rnn_layer_seq, static_argnames=("use_layer_norm",))
    step_fn = jax.jit(rnn_layer, static_argnames=("use_layer_norm",))

    # --- exact-precision (f32 weights) path ----------------------------------
    p_f32 = prepare_gru_params(w_ih, w_hh, b_ih, b_hh, gamma, beta,
                               compute_dtype=jnp.float32)

    # single GRU step == RnnLayer.forward(x, h)
    y1, h1 = step_fn(xs[0], h0, p_f32)
    jax.block_until_ready((y1, h1))
    y1_ref, h1_ref = gru_ln_ref_step(xs[0], h0, w_ih, w_hh, b_ih, b_hh,
                                     gamma, beta)
    assert jnp.allclose(y1, y1_ref, atol=1e-4, rtol=1e-4)
    assert jnp.allclose(h1, h1_ref, atol=1e-4, rtol=1e-4)

    # full sequence: weights resident in VMEM across the T-step grid
    ys, hT = seq_fn(xs, h0, p_f32)
    jax.block_until_ready((ys, hT))
    ys_ref, hT_ref = rnn_layer_seq_ref(xs, h0, w_ih, w_hh, b_ih, b_hh,
                                       gamma, beta)
    assert jnp.allclose(ys, ys_ref, atol=1e-4, rtol=1e-4)
    assert jnp.allclose(hT, hT_ref, atol=1e-4, rtol=1e-4)

    # --- bf16 weights (f32 accumulation + f32 gate/LN math) ------------------
    p_bf16 = prepare_gru_params(w_ih, w_hh, b_ih, b_hh, gamma, beta,
                                compute_dtype=jnp.bfloat16)
    ys_b, hT_b = seq_fn(xs, h0, p_bf16)
    jax.block_until_ready((ys_b, hT_b))
    ys_bref, hT_bref = rnn_layer_seq_ref(xs, h0, w_ih, w_hh, b_ih, b_hh,
                                         gamma, beta,
                                         compute_dtype=jnp.bfloat16)
    assert jnp.allclose(ys_b, ys_bref, atol=3e-2, rtol=3e-2)
    assert jnp.allclose(hT_b, hT_bref, atol=3e-2, rtol=3e-2)

    # --- use_layer_norm=False path -------------------------------------------
    ys_n, hT_n = seq_fn(xs, h0, p_f32, use_layer_norm=False)
    jax.block_until_ready((ys_n, hT_n))
    ys_nref, hT_nref = rnn_layer_seq_ref(xs, h0, w_ih, w_hh, b_ih, b_hh,
                                         gamma, beta, use_layer_norm=False)
    assert jnp.allclose(ys_n, ys_nref, atol=1e-4, rtol=1e-4)
    assert jnp.allclose(hT_n, hT_nref, atol=1e-4, rtol=1e-4)

    print("KERNEL_OK")
</pallas_src>

<mosaic_0001>
module attributes {stable_mosaic.version = 11 : i64} {
  func.func @gru_seq_kernel(%arg0: i32, %arg1: memref<1x8x384xf32, #tpu.memory_space<vmem>>, %arg2: memref<8x128xf32, #tpu.memory_space<vmem>>, %arg3: memref<128x384xf32, #tpu.memory_space<vmem>>, %arg4: memref<1x128xf32, #tpu.memory_space<vmem>>, %arg5: memref<1x128xf32, #tpu.memory_space<vmem>>, %arg6: memref<1x128xf32, #tpu.memory_space<vmem>>, %arg7: memref<1x8x128xf32, #tpu.memory_space<vmem>>, %arg8: memref<8x128xf32, #tpu.memory_space<vmem>>, %arg9: memref<8x128xf32, #tpu.memory_space<vmem>>) attributes {dimension_semantics = [#tpu.dimension_semantics<arbitrary>], iteration_bounds = array<i64: 1>, scalar_prefetch = 0 : i64, scratch_operands = 1 : i64, tpu.core_type = #tpu.core_type<tc>, window_params = [{transform_indices = @transform_0, window_bounds = array<i64: 1, 8, 384>}, {pipeline_mode = #tpu.pipeline_mode<synchronous>, transform_indices = @transform_1, window_bounds = array<i64: 8, 128>}, {pipeline_mode = #tpu.pipeline_mode<synchronous>, transform_indices = @transform_2, window_bounds = array<i64: 128, 384>}, {pipeline_mode = #tpu.pipeline_mode<synchronous>, transform_indices = @transform_3, window_bounds = array<i64: 1, 128>}, {pipeline_mode = #tpu.pipeline_mode<synchronous>, transform_indices = @transform_4, window_bounds = array<i64: 1, 128>}, {pipeline_mode = #tpu.pipeline_mode<synchronous>, transform_indices = @transform_5, window_bounds = array<i64: 1, 128>}, {transform_indices = @transform_6, window_bounds = array<i64: 1, 8, 128>}, {pipeline_mode = #tpu.pipeline_mode<synchronous>, transform_indices = @transform_7, window_bounds = array<i64: 8, 128>}]} {
    %c0_i32 = arith.constant 0 : i32
    %0 = arith.cmpi eq, %arg0, %c0_i32 : i32
    %1 = arith.extui %0 : i1 to i32
    %c0_i32_0 = arith.constant 0 : i32
    %2 = arith.cmpi ne, %1, %c0_i32_0 : i32
    scf.if %2 {
      %c0_28 = arith.constant 0 : index
      %c0_29 = arith.constant 0 : index
      %66 = vector.load %arg2[%c0_28, %c0_29] : memref<8x128xf32, #tpu.memory_space<vmem>>, vector<8x128xf32>
      %c0_30 = arith.constant 0 : index
      %c0_31 = arith.constant 0 : index
      %67 = vector.load %arg9[%c0_30, %c0_31] : memref<8x128xf32, #tpu.memory_space<vmem>>, vector<8x128xf32>
      tpu.vector_store %arg9[%c0_30, %c0_31], %66 {strides = array<i32>} : memref<8x128xf32, #tpu.memory_space<vmem>>, vector<8x128xf32>,
    } else {
    }
    %c0 = arith.constant 0 : index
    %c0_1 = arith.constant 0 : index
    %3 = vector.load %arg9[%c0, %c0_1] : memref<8x128xf32, #tpu.memory_space<vmem>>, vector<8x128xf32>
    %c0_2 = arith.constant 0 : index
    %c0_3 = arith.constant 0 : index
    %4 = vector.load %arg3[%c0_2, %c0_3] : memref<128x384xf32, #tpu.memory_space<vmem>>, vector<128x384xf32>
    %cst = arith.constant dense<0.000000e+00> : vector<8x384xf32>
    %5 = tpu.matmul %3, %4, %cst {dimension_numbers = #tpu.dot_dimension_numbers<[1], [0], [0], [1], [0, 0, 1, 1], [], []>} : vector<8x128xf32>, vector<128x384xf32>, vector<8x384xf32> -> vector<8x384xf32>
    %c0_4 = arith.constant 0 : index
    %c0_5 = arith.constant 0 : index
    %c0_6 = arith.constant 0 : index
    %6 = vector.load %arg1[%c0_4, %c0_5, %c0_6] : memref<1x8x384xf32, #tpu.memory_space<vmem>>, vector<1x8x384xf32>
    %7 = vector.shape_cast %6 : vector<1x8x384xf32> to vector<8x384xf32>
    %8 = vector.extract_strided_slice %7 {offsets = [0, 0], sizes = [8, 128], strides = [1, 1]} : vector<8x384xf32> to vector<8x128xf32>
    %9 = vector.extract_strided_slice %5 {offsets = [0, 0], sizes = [8, 128], strides = [1, 1]} : vector<8x384xf32> to vector<8x128xf32>
    %10 = arith.addf %8, %9 : vector<8x128xf32>
    %11 = arith.negf %10 : vector<8x128xf32>
    %12 = math.exp %11 : vector<8x128xf32>
    %cst_7 = arith.constant 1.000000e+00 : f32
    %13 = vector.broadcast %cst_7 : f32 to vector<8x128xf32>
    %14 = arith.addf %13, %12 : vector<8x128xf32>
    %15 = arith.divf %13, %14 : vector<8x128xf32>
    %16 = vector.extract_strided_slice %7 {offsets = [0, 128], sizes = [8, 128], strides = [1, 1]} : vector<8x384xf32> to vector<8x128xf32>
    %17 = vector.extract_strided_slice %5 {offsets = [0, 128], sizes = [8, 128], strides = [1, 1]} : vector<8x384xf32> to vector<8x128xf32>
    %18 = arith.addf %16, %17 : vector<8x128xf32>
    %19 = arith.negf %18 : vector<8x128xf32>
    %20 = math.exp %19 : vector<8x128xf32>
    %cst_8 = arith.constant 1.000000e+00 : f32
    %21 = vector.broadcast %cst_8 : f32 to vector<8x128xf32>
    %22 = arith.addf %21, %20 : vector<8x128xf32>
    %23 = arith.divf %21, %22 : vector<8x128xf32>
    %24 = vector.extract_strided_slice %7 {offsets = [0, 256], sizes = [8, 128], strides = [1, 1]} : vector<8x384xf32> to vector<8x128xf32>
    %25 = vector.extract_strided_slice %5 {offsets = [0, 256], sizes = [8, 128], strides = [1, 1]} : vector<8x384xf32> to vector<8x128xf32>
    %c0_9 = arith.constant 0 : index
    %c0_10 = arith.constant 0 : index
    %26 = vector.load %arg4[%c0_9, %c0_10] : memref<1x128xf32, #tpu.memory_space<vmem>>, vector<1x128xf32>
    %27 = vector.broadcast %26 : vector<1x128xf32> to vector<8x128xf32>
    %28 = arith.addf %25, %27 : vector<8x128xf32>
    %29 = arith.mulf %15, %28 : vector<8x128xf32>
    %30 = arith.addf %24, %29 : vector<8x128xf32>
    %31 = math.tanh %30 : vector<8x128xf32>
    %cst_11 = arith.constant 1.000000e+00 : f32
    %32 = vector.broadcast %cst_11 : f32 to vector<8x128xf32>
    %33 = arith.subf %32, %23 : vector<8x128xf32>
    %34 = arith.mulf %33, %31 : vector<8x128xf32>
    %35 = arith.mulf %23, %3 : vector<8x128xf32>
    %36 = arith.addf %34, %35 : vector<8x128xf32>
    %c0_12 = arith.constant 0 : index
    %c0_13 = arith.constant 0 : index
    %37 = vector.load %arg9[%c0_12, %c0_13] : memref<8x128xf32, #tpu.memory_space<vmem>>, vector<8x128xf32>
    tpu.vector_store %arg9[%c0_12, %c0_13], %36 {strides = array<i32>} : memref<8x128xf32, #tpu.memory_space<vmem>>, vector<8x128xf32>,
    %cst_14 = arith.constant dense<0.000000e+00> : vector<8xf32>
    %38 = vector.multi_reduction <add>, %36, %cst_14 [1] : vector<8x128xf32> to vector<8xf32>
    %39 = vector.shape_cast %38 : vector<8xf32> to vector<8x1xf32>
    %cst_15 = arith.constant 1.280000e+02 : f32
    %40 = vector.broadcast %cst_15 : f32 to vector<8x1xf32>
    %41 = arith.divf %39, %40 : vector<8x1xf32>
    %42 = vector.broadcast %41 : vector<8x1xf32> to vector<8x128xf32>
    %43 = arith.subf %36, %42 : vector<8x128xf32>
    %44 = arith.mulf %43, %43 : vector<8x128xf32>
    %cst_16 = arith.constant dense<0.000000e+00> : vector<8xf32>
    %45 = vector.multi_reduction <add>, %44, %cst_16 [1] : vector<8x128xf32> to vector<8xf32>
    %46 = vector.shape_cast %45 : vector<8xf32> to vector<8x1xf32>
    %cst_17 = arith.constant 1.280000e+02 : f32
    %47 = vector.broadcast %cst_17 : f32 to vector<8x1xf32>
    %48 = arith.divf %46, %47 : vector<8x1xf32>
    %cst_18 = arith.constant 9.99999974E-6 : f32
    %49 = vector.broadcast %cst_18 : f32 to vector<8x1xf32>
    %50 = arith.addf %48, %49 : vector<8x1xf32>
    %51 = math.rsqrt %50 : vector<8x1xf32>
    %52 = vector.broadcast %51 : vector<8x1xf32> to vector<8x128xf32>
    %53 = arith.mulf %43, %52 : vector<8x128xf32>
    %c0_19 = arith.constant 0 : index
    %c0_20 = arith.constant 0 : index
    %54 = vector.load %arg5[%c0_19, %c0_20] : memref<1x128xf32, #tpu.memory_space<vmem>>, vector<1x128xf32>
    %55 = vector.broadcast %54 : vector<1x128xf32> to vector<8x128xf32>
    %56 = arith.mulf %53, %55 : vector<8x128xf32>
    %c0_21 = arith.constant 0 : index
    %c0_22 = arith.constant 0 : index
    %57 = vector.load %arg6[%c0_21, %c0_22] : memref<1x128xf32, #tpu.memory_space<vmem>>, vector<1x128xf32>
    %58 = vector.broadcast %57 : vector<1x128xf32> to vector<8x128xf32>
    %59 = arith.addf %56, %58 : vector<8x128xf32>
    %c0_23 = arith.constant 0 : index
    %c0_24 = arith.constant 0 : index
    %c0_25 = arith.constant 0 : index
    %60 = vector.load %arg7[%c0_23, %c0_24, %c0_25] : memref<1x8x128xf32, #tpu.memory_space<vmem>>, vector<1x8x128xf32>
    %61 = vector.shape_cast %60 : vector<1x8x128xf32> to vector<8x128xf32>
    %62 = vector.shape_cast %59 : vector<8x128xf32> to vector<1x8x128xf32>
    tpu.vector_store %arg7[%c0_23, %c0_24, %c0_25], %62 {strides = array<i32>} : memref<1x8x128xf32, #tpu.memory_space<vmem>>, vector<1x8x128xf32>,
    %c0_i32_26 = arith.constant 0 : i32
    %63 = arith.cmpi eq, %arg0, %c0_i32_26 : i32
    %64 = arith.extui %63 : i1 to i32
    %c0_i32_27 = arith.constant 0 : i32
    %65 = arith.cmpi ne, %64, %c0_i32_27 : i32
    scf.if %65 {
      %c0_28 = arith.constant 0 : index
      %c0_29 = arith.constant 0 : index
      %66 = vector.load %arg8[%c0_28, %c0_29] : memref<8x128xf32, #tpu.memory_space<vmem>>, vector<8x128xf32>
      tpu.vector_store %arg8[%c0_28, %c0_29], %36 {strides = array<i32>} : memref<8x128xf32, #tpu.memory_space<vmem>>, vector<8x128xf32>,
    } else {
    }
    return
  }
  func.func @transform_0(%arg0: i32) -> (i32, i32, i32) {
    %c0_i32 = arith.constant 0 : i32
    %c0_i32_0 = arith.constant 0 : i32
    %c0_i32_1 = arith.constant 0 : i32
    return %arg0, %c0_i32, %c0_i32_0 : i32, i32, i32
  }
  func.func @transform_1(%arg0: i32) -> (i32, i32) {
    %c0_i32 = arith.constant 0 : i32
    %c0_i32_0 = arith.constant 0 : i32
    %c0_i32_1 = arith.constant 0 : i32
    return %c0_i32, %c0_i32_0 : i32, i32
  }
  func.func @transform_2(%arg0: i32) -> (i32, i32) {
    %c0_i32 = arith.constant 0 : i32
    %c0_i32_0 = arith.constant 0 : i32
    %c0_i32_1 = arith.constant 0 : i32
    return %c0_i32, %c0_i32_0 : i32, i32
  }
  func.func @transform_3(%arg0: i32) -> (i32, i32) {
    %c0_i32 = arith.constant 0 : i32
    %c0_i32_0 = arith.constant 0 : i32
    %c0_i32_1 = arith.constant 0 : i32
    return %c0_i32, %c0_i32_0 : i32, i32
  }
  func.func @transform_4(%arg0: i32) -> (i32, i32) {
    %c0_i32 = arith.constant 0 : i32
    %c0_i32_0 = arith.constant 0 : i32
    %c0_i32_1 = arith.constant 0 : i32
    return %c0_i32, %c0_i32_0 : i32, i32
  }
  func.func @transform_5(%arg0: i32) -> (i32, i32) {
    %c0_i32 = arith.constant 0 : i32
    %c0_i32_0 = arith.constant 0 : i32
    %c0_i32_1 = arith.constant 0 : i32
    return %c0_i32, %c0_i32_0 : i32, i32
  }
  func.func @transform_6(%arg0: i32) -> (i32, i32, i32) {
    %c0_i32 = arith.constant 0 : i32
    %c0_i32_0 = arith.constant 0 : i32
    %c0_i32_1 = arith.constant 0 : i32
    return %arg0, %c0_i32, %c0_i32_0 : i32, i32, i32
  }
  func.func @transform_7(%arg0: i32) -> (i32, i32) {
    %c0_i32 = arith.constant 0 : i32
    %c0_i32_0 = arith.constant 0 : i32
    %c0_i32_1 = arith.constant 0 : i32
    return %c0_i32, %c0_i32_0 : i32, i32
  }
}

</mosaic_0001>

<bundles_post_ra>
// kernel: rnn_layer.1
= control target key start
LH: loop header
LB: loop body
LE: loop exit
PB: predicated region body
PF: predicated region fallthrough
CT: control target
= control target key end

     0   :  { %13 = vsyncpa [#allocation4], 0  ;;  %v495_v7 = vmov 0.0|0.0   ;;  %v496_v8 = vmov 0.0   ;;  %vm497_vm0 = vmmov 0   ;;  %s737_s0 = inlined_call_operand.vmem [shape: f32[1,8,384], index: 0, kind: input, shape index: {}]   ;;  %s738_s1 = inlined_call_operand.vmem [shape: f32[8,128], index: 1, kind: input, shape index: {}]   ;;  %s739_s2 = inlined_call_operand.vmem [shape: f32[128,384], index: 2, kind: input, shape index: {}]   ;;  %s740_s3 = inlined_call_operand.vmem [shape: f32[1,128], index: 3, kind: input, shape index: {}]   ;;  %s741_s4 = inlined_call_operand.vmem [shape: f32[1,128], index: 4, kind: input, shape index: {}]   ;;  %s742_s5 = inlined_call_operand.vmem [shape: f32[1,128], index: 5, kind: input, shape index: {}]   ;;  %s743_s6 = inlined_call_operand.hbm [shape: f32[1,8,128], index: 6, kind: output, shape index: {0}]   ;;  %s744_s7 = inlined_call_operand.hbm [shape: f32[8,128], index: 7, kind: output, shape index: {1}]  }
   0x1   :  { %v35_v0 = vld [vmem:[%s739_s2 + $0x8] sm:$0xff]  ;;  %v38_v1 = vld [vmem:[%s739_s2 + $0x20] sm:$0xff]  ;;  %v37_v4 = vld [vmem:[%s739_s2 + $0x18] sm:$0xff]  ;;  %406 = vmatprep.subr.bf16.mxu1 %v495_v7  ;;  %146 = vmatprep.mubr.f32.mxu0 %v496_v8 }
   0x2   :  { %v34_v2 = vld [vmem:[%s739_s2] sm:$0xff]  ;;  %v374_v3 = vpack.c.bf16 %v38_v1, %v35_v0  ;;  %v41_v5 = vld [vmem:[%s739_s2 + $0x38] sm:$0xff]  ;;  %v44_v6 = vld [vmem:[%s739_s2 + $0x50] sm:$0xff]  ;;  %371 = vmatprep.mubr.msk.f32.mxu1 %vm497_vm0, %v496_v8 }
   0x3   :  { %v376_v9 = vpack.c.bf16 %v37_v4, %v34_v2  ;;  %v378_v10 = vpack.c.bf16 %v44_v6, %v41_v5  ;;  %v40_v11 = vld [vmem:[%s739_s2 + $0x30] sm:$0xff]  ;;  %v43_v12 = vld [vmem:[%s739_s2 + $0x48] sm:$0xff]  ;;  %v50_v14 = vld [vmem:[%s739_s2 + $0x80] sm:$0xff] }
   0x4   :  { %v47_v13 = vld [vmem:[%s739_s2 + $0x68] sm:$0xff]  ;;  %375 = vmatprep.subr.bf16.mxu0 %v374_v3  ;;  %v380_v15 = vpack.c.bf16 %v43_v12, %v40_v11  ;;  %v46_v17 = vld [vmem:[%s739_s2 + $0x60] sm:$0xff]  ;;  %v49_v18 = vld [vmem:[%s739_s2 + $0x78] sm:$0xff] }
   0x5   :  { %377 = vmatpush1.bf16.msra.mxu0 %v376_v9  ;;  %v382_v16 = vpack.c.bf16 %v50_v14, %v47_v13  ;;  %v53_v19 = vld [vmem:[%s739_s2 + $0x98] sm:$0xff]  ;;  %v56_v20 = vld [vmem:[%s739_s2 + $0xb0] sm:$0xff]  ;;  %v384_v21 = vpack.c.bf16 %v49_v18, %v46_v17  ;;  %v55_v24 = vld [vmem:[%s739_s2 + $0xa8] sm:$0xff] }
   0x6   :  { %379 = vmatprep.subr.bf16.mxu0 %v378_v10  ;;  %v52_v22 = vld [vmem:[%s739_s2 + $0x90] sm:$0xff]  ;;  %v386_v23 = vpack.c.bf16 %v56_v20, %v53_v19  ;;  %v39_v26 = vld [vmem:[%s739_s2 + $0x28] sm:$0xff]  ;;  %v62_v28 = vld [vmem:[%s739_s2 + $0xe0] sm:$0xff] }
   0x7   :  { %v36_v25 = vld [vmem:[%s739_s2 + $0x10] sm:$0xff]  ;;  %v59_v27 = vld [vmem:[%s739_s2 + $0xc8] sm:$0xff]  ;;  %v42_v30 = vld [vmem:[%s739_s2 + $0x40] sm:$0xff]  ;;  %v388_v32 = vpack.c.bf16 %v55_v24, %v52_v22 }
   0x8   :  { %v407_v29 = vpack.c.bf16 %v39_v26, %v36_v25  ;;  %v45_v31 = vld [vmem:[%s739_s2 + $0x58] sm:$0xff]  ;;  %v58_v33 = vld [vmem:[%s739_s2 + $0xc0] sm:$0xff]  ;;  %v390_v35 = vpack.c.bf16 %v62_v28, %v59_v27  ;;  %v48_v37 = vld [vmem:[%s739_s2 + $0x70] sm:$0xff] }
   0x9   :  { %381 = vmatpush1.bf16.msra.mxu0 %v380_v15  ;;  %v410_v34 = vpack.c.bf16 %v45_v31, %v42_v30  ;;  %v61_v36 = vld [vmem:[%s739_s2 + $0xd8] sm:$0xff]  ;;  %v51_v38 = vld [vmem:[%s739_s2 + $0x88] sm:$0xff]  ;;  %v68_v40 = vld [vmem:[%s739_s2 + $0x110] sm:$0xff] }
   0xa   :  { %383 = vmatprep.subr.bf16.mxu0 %v382_v16  ;;  %408 = vmatpush3.bf16.msra.mxu1 %v407_v29  ;;  %v65_v39 = vld [vmem:[%s739_s2 + $0xf8] sm:$0xff]  ;;  %v392_v41 = vpack.c.bf16 %v61_v36, %v58_v33  ;;  %v64_v42 = vld [vmem:[%s739_s2 + $0xf0] sm:$0xff]  ;;  %v413_v43 = vpack.c.bf16 %v51_v38, %v48_v37 }
   0xb   :  { %409 = vmatprep.subr.bf16.mxu1 %v495_v7 }
   0xd   :  { %385 = vmatpush1.bf16.msra.mxu0 %v384_v21 }
   0xe   :  { %387 = vmatprep.subr.bf16.mxu0 %v386_v23  ;;  %411 = vmatpush3.bf16.msra.mxu1 %v410_v34 }
  0x11   :  { %389 = vmatpush1.bf16.msra.mxu0 %v388_v32 }
  0x12   :  { %14 = vsyncpa [#allocation6], 0  ;;  %391 = vmatprep.subr.bf16.mxu0 %v390_v35  ;;  %v394_v44 = vpack.c.bf16 %v68_v40, %v65_v39  ;;  %v67_v45 = vld [vmem:[%s739_s2 + $0x108] sm:$0xff]  ;;  %412 = vmatprep.subr.bf16.mxu1 %v495_v7  ;;  %v54_v46 = vld [vmem:[%s739_s2 + $0xa0] sm:$0xff] }
  0x13   :  { %v57_v47 = vld [vmem:[%s739_s2 + $0xb8] sm:$0xff]  ;;  %v71_v48 = vld [vmem:[%s739_s2 + $0x128] sm:$0xff]  ;;  %v74_v49 = vld [vmem:[%s739_s2 + $0x140] sm:$0xff]  ;;  %v396_v50 = vpack.c.bf16 %v67_v45, %v64_v42  ;;  %414 = vmatpush3.bf16.msra.mxu1 %v413_v43 }
  0x14   :  { %v70_v51 = vld [vmem:[%s739_s2 + $0x120] sm:$0xff]  ;;  %v416_v52 = vpack.c.bf16 %v57_v47, %v54_v46  ;;  %v398_v53 = vpack.c.bf16 %v74_v49, %v71_v48  ;;  %v73_v54 = vld [vmem:[%s739_s2 + $0x138] sm:$0xff]  ;;  %415 = vmatprep.subr.bf16.mxu1 %v495_v7  ;;  %v60_v55 = vld [vmem:[%s739_s2 + $0xd0] sm:$0xff] }
  0x15   :  { %393 = vmatpush1.bf16.msra.mxu0 %v392_v41  ;;  %v63_v56 = vld [vmem:[%s739_s2 + $0xe8] sm:$0xff]  ;;  %v77_v57 = vld [vmem:[%s739_s2 + $0x158] sm:$0xff]  ;;  %v80_v58 = vld [vmem:[%s739_s2 + $0x170] sm:$0xff]  ;;  %v400_v59 = vpack.c.bf16 %v73_v54, %v70_v51 }
  0x16   :  { %395 = vmatprep.subr.bf16.mxu0 %v394_v44  ;;  %v76_v60 = vld [vmem:[%s739_s2 + $0x150] sm:$0xff]  ;;  %v419_v61 = vpack.c.bf16 %v63_v56, %v60_v55  ;;  %v402_v62 = vpack.c.bf16 %v80_v58, %v77_v57  ;;  %v79_v63 = vld [vmem:[%s739_s2 + $0x168] sm:$0xff]  ;;  %v66_v0 = vld [vmem:[%s739_s2 + $0x100] sm:$0xff] }
  0x17   :  { %417 = vmatpush3.bf16.msra.mxu1 %v416_v52  ;;  %v69_v1 = vld [vmem:[%s739_s2 + $0x118] sm:$0xff]  ;;  %v404_v2 = vpack.c.bf16 %v79_v63, %v76_v60  ;;  %v72_v4 = vld [vmem:[%s739_s2 + $0x130] sm:$0xff]  ;;  %v75_v5 = vld [vmem:[%s739_s2 + $0x148] sm:$0xff] }
  0x18   :  { %418 = vmatprep.subr.bf16.mxu1 %v495_v7  ;;  %v422_v3 = vpack.c.bf16 %v69_v1, %v66_v0  ;;  %v31_v6 = vld [vmem:[%s738_s1] sm:$0xff]  ;;  %v425_v8 = vpack.c.bf16 %v75_v5, %v72_v4  ;;  %v81_v10 = vld [vmem:[%s739_s2 + $0x178] sm:$0xff]  ;;  %v224_v16 = vld [vmem:[%s737_s0 + $0x8] sm:$0xff] }
  0x19   :  { %397 = vmatpush1.bf16.msra.mxu0 %v396_v50  ;;  %v78_v9 = vld [vmem:[%s739_s2 + $0x160] sm:$0xff]  ;;  %v225_v28 = vld [vmem:[%s737_s0 + $0x10] sm:$0xff] }
  0x1a   :  { %399 = vmatprep.subr.bf16.mxu0 %v398_v53  ;;  %v428_v11 = vpack.c.bf16 %v81_v10, %v78_v9  ;;  %v223_v12 = vld [vmem:[%s737_s0] sm:$0xff] }
  0x1b   :  { %420 = vmatpush3.bf16.msra.mxu1 %v419_v61  ;;  %v319_v24 = vld [vmem:[%s740_s3] ss:$0 sm:$0xff]  ;;  %s498_s3 = smov [#allocation5]  }
  0x1c   :  { %421 = vmatprep.subr.bf16.mxu1 %v495_v7  ;;  %s305_s13 = sshll.u32 %s498_s3, 4  ;;  %s306_s13 = int_to_ptr.vmem [resolvable:$true] %s305_s13 }
  0x1d   :  { %401 = vmatpush1.bf16.msra.mxu0 %v400_v59  ;;  %s447_s0 = scalar_lea.vmem %s306_s13, 128  ;;  %p452_p1 = scmp.lt.s32.totalorder %s306_s13, %s306_s13 }
  0x1e   :  { %403 = vmatprep.subr.bf16.mxu0 %v402_v62  ;;  %p448_p0 = scmp.ne.s32.totalorder %s306_s13, %s447_s0  ;;  %p453_p2 = scmp.lt.s32.totalorder %s447_s0, %s447_s0 }
  0x1f   :  { %423 = vmatpush3.bf16.msra.mxu1 %v422_v3 }
  0x20   :  { %424 = vmatprep.subr.bf16.mxu1 %v495_v7  ;;  %p454_p3 = por %p453_p2, %p452_p1 }
  0x21   :  { %405 = vmatpush1.bf16.msra.mxu0 %v404_v2 }
  0x22   :  { %p455_p4 = pnand %p454_p3, %p448_p0 }
  0x23   :  { %426 = vmatpush3.bf16.msra.mxu1 %v425_v8 }
  0x24   :  { %147 = vmatmul.mubr.f32.vlgmr.msra.gmra.mrb[0].mxu0 %v31_v6  ;;  %427 = vmatprep.subr.bf16.mxu1 %v495_v7 }
  0x27   :  { %429 = vmatpush3.bf16.msra.mxu1 %v428_v11 }
  0x2a   :  { %372 = vmatmul.mubr.f32.vlgmr.msra.gmra.mrb[0].mxu1 %v31_v6 }
  0xf7   :  { %v148_v13 = vpop.f32.mrb[0].mxu0 }
  0xf8   :  { %v226_v14 = vadd.f32 %v223_v12, %v148_v13  ;;  %v150_v15 = vpop.f32.mrb[1].mxu0 }
  0xf9   :  { %v233_v18 = vadd.f32 %v224_v16, %v150_v15 }
  0xfa   :  { %v317_v17 = vmul.f32 -1.442695, %v226_v14 }
  0xfb   :  { %v318_v19 = vmul.f32 -1.442695, %v233_v18 }
  0xfc   :  { %435 = vpow2.f32 %v317_v17 }
  0xfd   :  { %v219_v20 = vpop.f32.mrb[0].mxu1  ;;  %437 = vpow2.f32 %v318_v19 }
  0xfe   :  { %v373_v21 = vpop.f32.mrb[1].mxu1  ;;  %v247_v26 = vadd.f32 %v319_v24, %v219_v20 }
 0x106   :  { %v436_v7 = vpop.eup %435 }
 0x107   :  { %v230_v22 = vadd.f32 1.0, %v436_v7  ;;  %v438_v23 = vpop.eup %437 }
 0x108   :  { %v237_v25 = vadd.f32 1.0, %v438_v23 }
 0x109   :  { %439 = vrcp.f32 %v230_v22 }
 0x10a   :  { %441 = vrcp.f32 %v237_v25 }
 0x113   :  { %v440_v27 = vpop.eup %439 }
 0x114   :  { %v248_v29 = vmul.f32 %v440_v27, %v247_v26  ;;  %v442_v31 = vpop.eup %441 }
 0x115   :  { %v251_v32 = vsub.f32 1.0, %v442_v31  ;;  %v253_v35 = vmul.f32 %v442_v31, %v31_v6 }
 0x116   :  { %v249_v30 = vadd.f32 %v248_v29, %v225_v28 }
 0x118   :  { %443 = vtanh.f32 %v249_v30 }
 0x122   :  { %v444_v33 = vpop.eup %443 }
 0x123   :  { %v252_v34 = vmul.f32 %v444_v33, %v251_v32 }
 0x125   :  { %v254_v36 = vadd.f32 %v253_v35, %v252_v34 }
 0x127   :  { %256 = vadd.xlane.f32.xlu0 %v254_v36  ;;  %288 = vst [vmem:[#allocation5] sm:$0xff] %v254_v36 }
 0x1b4   :  { %v257_v37 = vpop.xlane.xlu0 %256 }
 0x1b5   :  { %v259_v38 = vmul.f32 0.0078125, %v257_v37 }
 0x1b7   :  { %v260_v39 = vsub.f32 %v254_v36, %v259_v38 }
 0x1b9   :  { %v261_v40 = vmul.f32 %v260_v39, %v260_v39 }
 0x1bb   :  { %262 = vadd.xlane.f32.xlu0 %v261_v40 }
 0x1bc   :  { %458 = shalt.err (!%p455_p4)
}
 0x1bd   :  { %s459_s16 = scalar_lea.hbm %s744_s7, 128 }
 0x1be   :  { %p460_p5 = scmp.ne.s32.totalorder %s744_s7, %s459_s16  ;;  %p463_p6 = scmp.lt.u32.totalorder %s459_s16, %s744_s7 }
 0x1c0   :  { %p465_p7 = pnand %p463_p6, %p460_p5 }
 0x1c2   :  { %468 = shalt.err (!%p465_p7)
}
 0x1c3   :  { %308 = dma.vmem_to_hbm [thread:$0]  %s306_s13, 128, %s744_s7, [#allocation6]   ;;  %v320_v45 = vld [vmem:[%s741_s4] ss:$0 sm:$0xff] }
 0x1c4   :  { %v321_v47 = vld [vmem:[%s742_s5] ss:$0 sm:$0xff]  ;;  %s499_s27 = smov [#allocation3]  }
 0x1c5   :  { %s295_s28 = sshll.u32 %s499_s27, 4  ;;  %s296_s28 = int_to_ptr.vmem [resolvable:$true] %s295_s28 }
 0x1c6   :  { %s469_s7 = scalar_lea.vmem %s296_s28, 128  ;;  %p474_p9 = scmp.lt.s32.totalorder %s296_s28, %s296_s28 }
 0x1c7   :  { %p470_p8 = scmp.ne.s32.totalorder %s296_s28, %s469_s7  ;;  %p475_p10 = scmp.lt.s32.totalorder %s469_s7, %s469_s7 }
 0x1c9   :  { %p476_p11 = por %p475_p10, %p474_p9 }
 0x1cb   :  { %p477_p12 = pnand %p476_p11, %p470_p8 }
 0x248   :  { %v263_v41 = vpop.xlane.xlu0 %262 }
 0x249   :  { %v264_v42 = vmul.f32 0.0078125, %v263_v41 }
 0x24b   :  { %v265_v43 = vadd.f32 1e-05, %v264_v42 }
 0x24d   :  { %445 = vrsqrt.f32 %v265_v43 }
 0x257   :  { %v446_v44 = vpop.eup %445 }
 0x258   :  { %v267_v46 = vmul.f32 %v446_v44, %v260_v39 }
 0x25a   :  { %v275_v48 = vmul.f32 %v320_v45, %v267_v46 }
 0x25c   :  { %v283_v49 = vadd.f32 %v321_v47, %v275_v48 }
 0x25e   :  { %284 = vst [vmem:[#allocation3] sm:$0xff] %v283_v49 }
 0x25f   :  { %480 = shalt.err (!%p477_p12)
}
 0x260   :  { %s481_s1 = scalar_lea.hbm %s743_s6, 128 }
 0x261   :  { %p482_p13 = scmp.ne.s32.totalorder %s743_s6, %s481_s1  ;;  %p485_p0 = scmp.lt.u32.totalorder %s481_s1, %s743_s6 }
 0x263   :  { %p487_p1 = pnand %p485_p0, %p482_p13 }
 0x265   :  { %490 = shalt.err (!%p487_p1)
}
 0x266   :  { %298 = dma.vmem_to_hbm [thread:$0]  %s296_s28, 128, %s743_s6, [#allocation4]  }
 0x267   :  { %491 = dma.done.wait [#allocation4], 128  }
 0x268   :  { %492 = vsyncadd [#allocation4], 4294967168 }
 0x269   :  { %493 = dma.done.wait [#allocation6], 128  }
 0x26a   :  { %494 = vsyncadd [#allocation6], 4294967168 }
 0x26b   :  { %315 = vsyncpa [#allocation4], 1 }
 0x26c   :  { %316 = vsyncpa [#allocation6], 1 }

</bundles_post_ra>
